<compile_context>
chip_gen: v7x
topology: tpu7x:2x2x1
jax: 0.10.0
libtpu: 0.0.40
codegen_flags: <defaults>
</compile_context>

<pallas_src>
import jax
import jax.numpy as jnp
from jax.experimental import pallas as pl
from jax.experimental.pallas import tpu as pltpu


def _round_up(a, b):
    return (a + b - 1) // b * b


# ---------------------------------------------------------------------------
# Pass 1: pooled spatial sum  (N, C, HW_pad) -> (N, C, 1)  [f32 accumulator]
# ---------------------------------------------------------------------------
def pooled_sum_kernel(x_ref, sum_ref):
    t = pl.program_id(1)

    @pl.when(t == 0)
    def _():
        sum_ref[...] = jnp.zeros_like(sum_ref)

    # x block: (1, C, tile_hw); accumulate the partial spatial sum in f32.
    x = x_ref[0].astype(jnp.float32)                          # (C, tile_hw)
    sum_ref[0] += jnp.sum(x, axis=-1, keepdims=True)          # (C, 1)


# ---------------------------------------------------------------------------
# Pass 2: broadcast scale  y[n, :, tile] = x[n, :, tile] * s[n, :, 0]
# ---------------------------------------------------------------------------
def scale_kernel(x_ref, s_ref, o_ref):
    # x block: (1, C, tile_hw), s block: (1, C, 1) — lane-broadcast multiply
    # in the input's native dtype (no whole-tile upcast).
    o_ref[0] = (x_ref[0] * s_ref[0]).astype(o_ref.dtype)


def channel_attention(x_nchw, w1, b1, w2, b2, *, tile_hw_max=1024):
    """x_nchw: (N, C, H, W); w1: (Cr, C); b1: (Cr,); w2: (C, Cr); b2: (C,)."""
    N, C, H, W = x_nchw.shape
    HW = H * W
    out_dtype = x_nchw.dtype

    # Lane-dense tile: multiple of 128, capped so double-buffered in+out blocks
    # stay tiny relative to every generation's scoped VMEM (v5e 16 MiB default,
    # v7x 64 MiB physical).  C=64, tile=1024, f32 -> 256 KiB per block.
    tile_hw = min(tile_hw_max, _round_up(HW, 128))
    hw_pad = _round_up(HW, tile_hw)
    num_tiles = hw_pad // tile_hw

    x_flat = x_nchw.reshape(N, C, HW)
    if hw_pad != HW:
        # Zero padding: does not affect the sum; mean divides by true HW below.
        x_flat = jnp.pad(x_flat, ((0, 0), (0, 0), (0, hw_pad - HW)))

    # ---- Pass 1: spatial sums (Pallas, reduction axis last / accumulator) ----
    sums = pl.pallas_call(
        pooled_sum_kernel,
        out_shape=jax.ShapeDtypeStruct((N, C, 1), jnp.float32),
        grid_spec=pltpu.PrefetchScalarGridSpec(
            num_scalar_prefetch=0,
            grid=(N, num_tiles),
            in_specs=[
                pl.BlockSpec((1, C, tile_hw), lambda n, t: (n, 0, t)),
            ],
            out_specs=pl.BlockSpec((1, C, 1), lambda n, t: (n, 0, 0)),
        ),
        compiler_params=pltpu.CompilerParams(
            dimension_semantics=("parallel", "arbitrary"),
        ),
    )(x_flat)

    # ---- Gate: tiny FCs batched over N as one GEMM each (plain XLA) ---------
    avg = sums[:, :, 0] / jnp.float32(HW)                      # (N, C), true HW
    w1f = w1.astype(jnp.float32)
    b1f = b1.astype(jnp.float32)
    w2f = w2.astype(jnp.float32)
    b2f = b2.astype(jnp.float32)
    h = jnp.maximum(avg @ w1f.T + b1f, 0.0)                    # (N, Cr)
    s = jax.nn.sigmoid(h @ w2f.T + b2f)                        # (N, C)
    s = s.astype(out_dtype).reshape(N, C, 1)

    # ---- Pass 2: broadcast multiply (Pallas, fully parallel, lane-dense) ----
    y_pad = pl.pallas_call(
        scale_kernel,
        out_shape=jax.ShapeDtypeStruct((N, C, hw_pad), out_dtype),
        grid_spec=pltpu.PrefetchScalarGridSpec(
            num_scalar_prefetch=0,
            grid=(N, num_tiles),
            in_specs=[
                pl.BlockSpec((1, C, tile_hw), lambda n, t: (n, 0, t)),  # x
                pl.BlockSpec((1, C, 1), lambda n, t: (n, 0, 0)),        # s gate
            ],
            out_specs=pl.BlockSpec((1, C, tile_hw), lambda n, t: (n, 0, t)),
        ),
        compiler_params=pltpu.CompilerParams(
            dimension_semantics=("parallel", "parallel"),
        ),
    )(x_flat, s)

    return y_pad[:, :, :HW].reshape(N, C, H, W)


def reference(x, w1, b1, w2, b2):
    # Plain-JAX reference mirroring the PyTorch module.
    avg = jnp.mean(x, axis=(2, 3))                             # (N, C)
    h = jnp.maximum(avg @ w1.T + b1, 0.0)                      # (N, Cr)
    s = jax.nn.sigmoid(h @ w2.T + b2)                          # (N, C)
    return x * s[:, :, None, None]


if __name__ == "__main__":
    # Module defaults: channels=64, reduction=16 -> Cr=4.  Small spatial size
    # chosen so that both the HW-padding path (400 -> 512) and the multi-tile
    # reduction accumulation (2 tiles of 256) are exercised.
    N, C, H, W = 2, 64, 20, 20
    reduction = 16
    Cr = C // reduction

    key = jax.random.PRNGKey(0)
    kx, k1, k2, k3, k4 = jax.random.split(key, 5)

    x = jax.random.normal(kx, (N, C, H, W), dtype=jnp.float32)
    # 1x1 conv weights squeezed to 2-D, deterministic synthetic params.
    w1 = jax.random.normal(k1, (Cr, C), dtype=jnp.float32) * 0.1
    b1 = jax.random.normal(k2, (Cr,), dtype=jnp.float32) * 0.1
    w2 = jax.random.normal(k3, (C, Cr), dtype=jnp.float32) * 0.1
    b2 = jax.random.normal(k4, (C,), dtype=jnp.float32) * 0.1

    y = channel_attention(x, w1, b1, w2, b2, tile_hw_max=256)
    y = jax.block_until_ready(y)

    y_ref = reference(x, w1, b1, w2, b2)
    assert y.shape == (N, C, H, W)
    assert jnp.allclose(y, y_ref, atol=1e-5, rtol=1e-5), "mismatch vs reference"

    print("KERNEL_OK")
</pallas_src>

<mosaic_0001>
module attributes {stable_mosaic.version = 11 : i64} {
  func.func @pooled_sum_kernel(%arg0: i32, %arg1: i32, %arg2: memref<1x64x256xf32, #tpu.memory_space<vmem>>, %arg3: memref<1x64x1xf32, #tpu.memory_space<vmem>>) attributes {dimension_semantics = [#tpu.dimension_semantics<parallel>, #tpu.dimension_semantics<arbitrary>], iteration_bounds = array<i64: 2, 2>, scalar_prefetch = 0 : i64, scratch_operands = 0 : i64, tpu.core_type = #tpu.core_type<tc>, window_params = [{transform_indices = @transform_0, window_bounds = array<i64: 1, 64, 256>}, {transform_indices = @transform_1, window_bounds = array<i64: 1, 64, 1>}]} {
    %c0_i32 = arith.constant 0 : i32
    %0 = arith.cmpi eq, %arg1, %c0_i32 : i32
    %1 = arith.extui %0 : i1 to i32
    %c0_i32_0 = arith.constant 0 : i32
    %2 = arith.cmpi ne, %1, %c0_i32_0 : i32
    scf.if %2 {
      %cst_9 = arith.constant 0.000000e+00 : f32
      %13 = vector.broadcast %cst_9 : f32 to vector<1x64x1xf32>
      %c0_10 = arith.constant 0 : index
      %c0_11 = arith.constant 0 : index
      %c0_12 = arith.constant 0 : index
      %14 = vector.load %arg3[%c0_10, %c0_11, %c0_12] : memref<1x64x1xf32, #tpu.memory_space<vmem>>, vector<1x64x1xf32>
      tpu.vector_store %arg3[%c0_10, %c0_11, %c0_12], %13 {strides = array<i32>} : memref<1x64x1xf32, #tpu.memory_space<vmem>>, vector<1x64x1xf32>,
    } else {
    }
    %c0 = arith.constant 0 : index
    %c0_1 = arith.constant 0 : index
    %c0_2 = arith.constant 0 : index
    %3 = vector.load %arg2[%c0, %c0_1, %c0_2] : memref<1x64x256xf32, #tpu.memory_space<vmem>>, vector<1x64x256xf32>
    %4 = vector.shape_cast %3 : vector<1x64x256xf32> to vector<64x256xf32>
    %c0_3 = arith.constant 0 : index
    %c0_4 = arith.constant 0 : index
    %c0_5 = arith.constant 0 : index
    %5 = vector.load %arg3[%c0_3, %c0_4, %c0_5] : memref<1x64x1xf32, #tpu.memory_space<vmem>>, vector<1x64x1xf32>
    %6 = vector.shape_cast %5 : vector<1x64x1xf32> to vector<64x1xf32>
    %cst = arith.constant dense<0.000000e+00> : vector<64xf32>
    %7 = vector.multi_reduction <add>, %4, %cst [1] : vector<64x256xf32> to vector<64xf32>
    %8 = vector.shape_cast %7 : vector<64xf32> to vector<64x1xf32>
    %9 = arith.addf %6, %8 : vector<64x1xf32>
    %c0_6 = arith.constant 0 : index
    %c0_7 = arith.constant 0 : index
    %c0_8 = arith.constant 0 : index
    %10 = vector.load %arg3[%c0_6, %c0_7, %c0_8] : memref<1x64x1xf32, #tpu.memory_space<vmem>>, vector<1x64x1xf32>
    %11 = vector.shape_cast %10 : vector<1x64x1xf32> to vector<64x1xf32>
    %12 = vector.shape_cast %9 : vector<64x1xf32> to vector<1x64x1xf32>
    tpu.vector_store %arg3[%c0_6, %c0_7, %c0_8], %12 {strides = array<i32>} : memref<1x64x1xf32, #tpu.memory_space<vmem>>, vector<1x64x1xf32>,
    return
  }
  func.func @transform_0(%arg0: i32, %arg1: i32) -> (i32, i32, i32) {
    %c0_i32 = arith.constant 0 : i32
    %c0_i32_0 = arith.constant 0 : i32
    return %arg0, %c0_i32, %arg1 : i32, i32, i32
  }
  func.func @transform_1(%arg0: i32, %arg1: i32) -> (i32, i32, i32) {
    %c0_i32 = arith.constant 0 : i32
    %c0_i32_0 = arith.constant 0 : i32
    %c0_i32_1 = arith.constant 0 : i32
    return %arg0, %c0_i32, %c0_i32_0 : i32, i32, i32
  }
}

</mosaic_0001>

<bundles_post_ra>
// kernel: tpu_custom_call.1
= control target key start
LH: loop header
LB: loop body
LE: loop exit
PB: predicated region body
PF: predicated region fallthrough
CT: control target
= control target key end

     0   :  { %6 = vsyncpa [#allocation3], 0  ;;  %s719_s0 = inlined_call_operand.hbm [shape: f32[2,64,512], index: 0, kind: input, shape index: {}]   ;;  %s720_s1 = inlined_call_operand.vmem [shape: f32[2,64,1], index: 1, kind: output, shape index: {}]  }
   0x1   :  { %8 = vsyncpa [#allocation3 + $0x1], 0  ;;  %s517_s6 = smov 0   ;;  %s519_s7 = smov 0  }
   0x2   :  { %s521_s8 = smov 0   ;;  %s523_s9 = smov 0  }
   0x3   :  { %s525_s10 = smov 0   ;;  %s527_s11 = smov 0  }
   0x4   :  { %s529_s12 = smov 0   ;;  %s531_s13 = smov 0  }
   0x5 LB: > { %s313_s14 = sadd.s32 4294967295, %s500_s13   ;;  %s23_s15 = sadd.s32 1, %s492_s11  ;;  %s500_s13 = sphi %s531_s13, %s14_s13   ;;  %s496_s12 = sphi %s529_s12, %s730_s12   ;;  %s492_s11 = sphi %s527_s11, %s729_s11   ;;  %s488_s10 = sphi %s525_s10, %s728_s10   ;;  %s484_s9 = sphi %s523_s9, %s727_s9   ;;  %s480_s8 = sphi %s521_s8, %s726_s8   ;;  %s476_s7 = sphi %s519_s7, %s725_s7   ;;  %s472_s6 = sphi %s517_s6, %s724_s6  }
   0x6   : > { %p24_p0 = scmp.ge.s32.totalorder %s23_s15, 2  ;;  %s26_s16 = sadd.s32 1, %s496_s12 }
   0x7   : > { %s35_s17 = sadd.s32 1, %s480_s8  ;;  %p42_p1 = scmp.ne.s32.totalorder %s480_s8, %s476_s7 }
   0x8   : > { %s732_s15 = smov (%p24_p0, %s23_s15), 0  ;;  %s734_s16 = smov (!%p24_p0, %s26_s16), %s496_s12 }
   0x9   : > { %s31_s18 = ssub.s32 %s492_s11, %s732_s15  ;;  %p43_p2 = scmp.eq.s32.totalorder %s500_s13, 0 }
   0xa   : > { %p28_p3 = scmp.ge.s32.totalorder %s734_s16, 2  ;;  %p48_p4 = scmp.ne.s32.totalorder %s476_s7, %s472_s6 }
   0xb   : > { %p568_p5 = por %p43_p2, %p42_p1  ;;  %p49_p6 = scmp.eq.s32.totalorder %s313_s14, 0 }
   0xc   : > { %s736_s16 = smov (%p28_p3, %s734_s16), 0  ;;  %p335_p8 = scmp.lt.s32.totalorder %s500_s13, 4 }
   0xd   : > { %p574_p7 = por %p49_p6, %p48_p4  ;;  %s30_s21 = ssub.s32 %s496_s12, %s736_s16 }
   0xe   : > { %s32_s22 = sor.u32 %s31_s18, %s30_s21  ;;  %s98_s23 = sand.u32 1, %s480_s8  }
   0xf   : > { %p33_p9 = scmp.eq.s32.totalorder %s32_s22, 0  ;;  %s317_s24 = sshll.u32 %s98_s23, 7 }
  0x10   : > { %s318_s25 = sshll.u32 %s492_s11, 1  ;;  %s319_s27 = sshll.u32 %s496_s12, 5 }
  0x11   : > { %s584_s26 = scalar_select %p33_p9, %s480_s8, %s35_s17  }
  0x12   : > { %s108_s28 = sadd.s32 %s319_s27, %s318_s25  ;;  %s102_s29 = scalar_lea.vmem [#allocation2], %s317_s24 }
  0x13   : > { %s111_s30 = sshll.u32 %s102_s29, 4  ;;  %s320_s2 = sshll.u32 %s108_s28, 7  ;;  %s587_s30 = int_to_ptr.vmem [resolvable:$true] %s111_s30 }
  0x14   : > { %s592_s5 = scalar_lea.hbm %s719_s0, %s320_s2  ;;  %p598_p10 = pnand %p335_p8, %p568_p5 }
  0x15   : > { %s602_s14 = scalar_lea.sflag [#allocation3], %s98_s23  ;;  %s404_s17 = scalar_lea.hbm %s592_s5, 2048 }
  0x16   : > { %p405_p11 = scmp.ne.s32.totalorder %s592_s5, %s404_s17  ;;  %p406_p12 = pneg %p598_p10 }
  0x17   : > { %s409_s21 = scalar_lea.hbm %s719_s0, 8192  ;;  %p410_p1 = scmp.lt.u32.totalorder %s592_s5, %s719_s0 }
  0x18   : > { %p407_p13 = pnand %p406_p12, %p405_p11  ;;  %p411_p2 = scmp.lt.u32.totalorder %s409_s21, %s404_s17 }
  0x19   : > { %p413_p4 = scmp.lt.u32.totalorder %s404_s17, %s592_s5 }
  0x1a   : > { %p408_p0 = pneg %p407_p13  ;;  %p412_p3 = por %p411_p2, %p410_p1 }
  0x1c   : > { %p414_p5 = por %p413_p4, %p412_p3 }
  0x1e   : > { %p415_p6 = pnand %p414_p5, %p408_p0 }
  0x20   : > { %418 = shalt.err (!%p415_p6)
}
  0x21   : > { %s419_s23 = scalar_lea.vmem %s587_s30, 2048  ;;  %s502_s25 = smov [#allocation2]  }
  0x22   : > { %p420_p8 = scmp.ne.s32.totalorder %s587_s30, %s419_s23  ;;  %s424_s27 = sshll.u32 %s502_s25, 4  ;;  %s425_s27 = int_to_ptr.vmem [resolvable:$false] %s424_s27 }
  0x23   : > { %s426_s28 = scalar_lea.vmem %s425_s27, 4096  ;;  %p427_p13 = scmp.lt.s32.totalorder %s587_s30, %s425_s27 }
  0x24   : > { %p422_p9 = pnand %p420_p8, %p406_p12  ;;  %p428_p1 = scmp.lt.s32.totalorder %s426_s28, %s419_s23 }
  0x26   : > { %p423_p11 = pneg %p422_p9  ;;  %p429_p2 = por %p428_p1, %p427_p13 }
  0x28   : > { %p430_p3 = pnand %p429_p2, %p423_p11 }
  0x2a   : > { %433 = shalt.err (!%p430_p3)
}
  0x2b   : > { %s503_s29 = smov 512   ;;  %s504_s2 = smov 256  }
  0x2c   : > { %s505_s3 = smov 16   ;;  %p321_p12 = scmp.ge.s32.totalorder %s500_s13, 1 }
  0x2d   : > { %334 = dma.hbm_to_vmem [thread:$0]  (!%p598_p10), %s592_s5, 2048, %s587_s30, %s602_s14, %s503_s29, %s504_s2, %s505_s3  }
  0x2e   : > { %p119_p0 = scmp.lt.s32.totalorder %s500_s13, 5 }
  0x30   : > { %p120_p4 = pnand %p321_p12, %p119_p0 }
  0x31   : > { %s125_s4 = sand.u32 (!%p120_p4), 1, %s476_s7  }
  0x32   : > { %123 = sbr.rel (%p120_p4) target bundleno = 228 (0xe4), region = 24  ;;  %s322_s17 = sshll.u32 (!%p120_p4), %s125_s4, 7 }
  0x33   : > { %s126_s18 = scalar_lea.sflag (!%p120_p4), [#allocation3], %s125_s4  ;;  %s633_s19 = scalar_lea.vmem (!%p120_p4), [#allocation2], %s322_s17 }
  0x39   : > { %467 = dma.done.wait (%p574_p7), %s126_s18, 2048  }
  0x3a   : > { %469 = vsyncadd (%p574_p7), %s126_s18, 4294965248  ;;  %p149_p5 = scmp.lt.s32.totalorder %s488_s10, 1  ;;  %p325_p10 = scmp.ne.s32.totalorder %s484_s9, 0 }
  0x3b   : > { %vm158_vm0 = vcmask (!%p325_p10), 7168   ;;  %v506_v0 = vmov (!%p325_p10), 0.0  }
  0x3c   : > { %s738_s10 = smov (!%p149_p5, %s488_s10), 1  ;;  %157 = sbr.rel (%p325_p10) target bundleno = 67 (0x43), region = 32 }
  0x3d   : > { %s328_s30 = sshll.u32 %s738_s10, 6 }
  0x3e   : > { %s644_s14 = scalar_lea.vmem %s720_s1, %s328_s30 }
  0x3f   : > { %159 = vst.msk [vmem:[%s644_s14] sm:$0xff] (!%p325_p10), %vm158_vm0, %v506_v0  ;;  %160 = vst.msk [vmem:[%s644_s14 + $0x8] sm:$0xff] (!%p325_p10), %vm158_vm0, %v506_v0 }
  0x40   : > { %161 = vst.msk [vmem:[%s644_s14 + $0x10] sm:$0xff] (!%p325_p10), %vm158_vm0, %v506_v0  ;;  %162 = vst.msk [vmem:[%s644_s14 + $0x18] sm:$0xff] (!%p325_p10), %vm158_vm0, %v506_v0 }
  0x41   : > { %163 = vst.msk [vmem:[%s644_s14 + $0x20] sm:$0xff] (!%p325_p10), %vm158_vm0, %v506_v0  ;;  %164 = vst.msk [vmem:[%s644_s14 + $0x28] sm:$0xff] (!%p325_p10), %vm158_vm0, %v506_v0 }
  0x42   : > { %165 = vst.msk [vmem:[%s644_s14 + $0x30] sm:$0xff] (!%p325_p10), %vm158_vm0, %v506_v0  ;;  %166 = vst.msk [vmem:[%s644_s14 + $0x38] sm:$0xff] (!%p325_p10), %vm158_vm0, %v506_v0 }
  0x43 PF: > { %v171_v1 = vld [vmem:[%s633_s19 + $0x20] sm:$0xff]  ;;  %v172_v2 = vld [vmem:[%s633_s19 + $0x28] sm:$0xff]  ;;  %v173_v6 = vld [vmem:[%s633_s19 + $0x30] sm:$0xff]  ;;  %vm223_vm1 = vcmask 7168  }
  0x44   : > { %v167_v3 = vld [vmem:[%s633_s19] sm:$0xff]  ;;  %v197_v4 = vadd.f32 %v172_v2, %v171_v1  ;;  %v168_v5 = vld [vmem:[%s633_s19 + $0x8] sm:$0xff]  ;;  %v174_v7 = vld [vmem:[%s633_s19 + $0x38] sm:$0xff] }
  0x45   : > { %v191_v8 = vadd.f32 %v168_v5, %v167_v3  ;;  %v169_v9 = vld [vmem:[%s633_s19 + $0x10] sm:$0xff]  ;;  %v170_v10 = vld [vmem:[%s633_s19 + $0x18] sm:$0xff]  ;;  %v200_v11 = vadd.f32 %v174_v7, %v173_v6  ;;  %v175_v15 = vld [vmem:[%s633_s19 + $0x40] sm:$0xff] }
  0x46   : > { %198 = vadd.xlane.f32.xlu1 %v197_v4  ;;  %v194_v12 = vadd.f32 %v170_v10, %v169_v9  ;;  %v177_v13 = vld [vmem:[%s633_s19 + $0x50] sm:$0xff]  ;;  %v178_v14 = vld [vmem:[%s633_s19 + $0x58] sm:$0xff]  ;;  %v176_v16 = vld [vmem:[%s633_s19 + $0x48] sm:$0xff] }
  0x47   : > { %192 = vadd.xlane.f32.xlu0 %v191_v8  ;;  %v206_v17 = vadd.f32 %v178_v14, %v177_v13  ;;  %v203_v18 = vadd.f32 %v176_v16, %v175_v15  ;;  %v181_v19 = vld [vmem:[%s633_s19 + $0x70] sm:$0xff]  ;;  %v182_v20 = vld [vmem:[%s633_s19 + $0x78] sm:$0xff]  ;;  %v179_v21 = vld [vmem:[%s633_s19 + $0x60] sm:$0xff] }
  0x48   : > { %v180_v22 = vld [vmem:[%s633_s19 + $0x68] sm:$0xff]  ;;  %v212_v23 = vadd.f32 %v182_v20, %v181_v19  ;;  %v185_v25 = vld [vmem:[%s644_s14 + $0x10] sm:$0xff]  ;;  %v183_v26 = vld [vmem:[%s644_s14] sm:$0xff] }
  0x49   : > { %v209_v24 = vadd.f32 %v180_v22, %v179_v21  ;;  %v186_v31 = vld [vmem:[%s644_s14 + $0x18] sm:$0xff]  ;;  %v184_v32 = vld [vmem:[%s644_s14 + $0x8] sm:$0xff]  ;;  %v187_v38 = vld [vmem:[%s644_s14 + $0x20] sm:$0xff] }
  0x4a   : > { %201 = vadd.xlane.f32.xlu1 %v200_v11  ;;  %v188_v37 = vld [vmem:[%s644_s14 + $0x28] sm:$0xff]  ;;  %v190_v43 = vld [vmem:[%s644_s14 + $0x38] sm:$0xff]  ;;  %v189_v44 = vld [vmem:[%s644_s14 + $0x30] sm:$0xff] }
  0x4b   : > { %195 = vadd.xlane.f32.xlu0 %v194_v12 }
  0x4e   : > { %207 = vadd.xlane.f32.xlu1 %v206_v17 }
  0x4f   : > { %204 = vadd.xlane.f32.xlu0 %v203_v18 }
  0x52   : > { %213 = vadd.xlane.f32.xlu1 %v212_v23 }
  0x53   : > { %210 = vadd.xlane.f32.xlu0 %v209_v24 }
  0xd3   : > { %v199_v27 = vpop.xlane.xlu1 %198 }
  0xd4   : > { %v217_v28 = vadd.f32 %v199_v27, %v185_v25  ;;  %v193_v29 = vpop.xlane.xlu0 %192 }
  0xd5   : > { %v215_v30 = vadd.f32 %v193_v29, %v183_v26 }
  0xd6   : > { %226 = vst.msk [vmem:[%s644_s14 + $0x10] sm:$0xff] %vm223_vm1, %v217_v28 }
  0xd7   : > { %224 = vst.msk [vmem:[%s644_s14] sm:$0xff] %vm223_vm1, %v215_v30  ;;  %v202_v33 = vpop.xlane.xlu1 %201 }
  0xd8   : > { %v218_v34 = vadd.f32 %v202_v33, %v186_v31  ;;  %v196_v35 = vpop.xlane.xlu0 %195 }
  0xd9   : > { %v216_v36 = vadd.f32 %v196_v35, %v184_v32 }
  0xda   : > { %227 = vst.msk [vmem:[%s644_s14 + $0x18] sm:$0xff] %vm223_vm1, %v218_v34 }
  0xdb   : > { %225 = vst.msk [vmem:[%s644_s14 + $0x8] sm:$0xff] %vm223_vm1, %v216_v36  ;;  %v208_v39 = vpop.xlane.xlu1 %207 }
  0xdc   : > { %v220_v40 = vadd.f32 %v208_v39, %v188_v37  ;;  %v205_v41 = vpop.xlane.xlu0 %204 }
  0xdd   : > { %v219_v42 = vadd.f32 %v205_v41, %v187_v38 }
  0xde   : > { %229 = vst.msk [vmem:[%s644_s14 + $0x28] sm:$0xff] %vm223_vm1, %v220_v40 }
  0xdf   : > { %228 = vst.msk [vmem:[%s644_s14 + $0x20] sm:$0xff] %vm223_vm1, %v219_v42  ;;  %v214_v45 = vpop.xlane.xlu1 %213 }
  0xe0   : > { %v222_v46 = vadd.f32 %v214_v45, %v190_v43  ;;  %v211_v47 = vpop.xlane.xlu0 %210 }
  0xe1   : > { %v221_v48 = vadd.f32 %v211_v47, %v189_v44 }
  0xe2   : > { %231 = vst.msk [vmem:[%s644_s14 + $0x38] sm:$0xff] %vm223_vm1, %v222_v46 }
  0xe3   : > { %230 = vst.msk [vmem:[%s644_s14 + $0x30] sm:$0xff] %vm223_vm1, %v221_v48 }
  0xe4 PF: > { %s14_s13 = sadd.s32 1, %s500_s13   ;;  %s724_s6 = smov %s476_s7 }
  0xe5   : > { %p11_p7 = scmp.ge.s32.totalorder %s14_s13, 6   ;;  %s725_s7 = smov %s480_s8 }
  0xe6   : > { %s726_s8 = smov %s584_s26  ;;  %s727_s9 = smov %s492_s11 }
  0xe7   : > { %s728_s10 = smov %s496_s12  ;;  %s729_s11 = smov %s732_s15 }
  0xe8   : > { %s730_s12 = smov %s736_s16  ;;  %13 = sbr.rel (!%p11_p7) target bundleno = 5 (0x5), region = 68 }
  0xef   :  { %253 = vsyncpa [#allocation3], 1 }
  0xf0   :  { %255 = vsyncpa [#allocation3 + $0x1], 1 }

</bundles_post_ra>
